<compile_context>
chip_gen: v7x
topology: tpu7x:2x2x1
jax: 0.10.0
libtpu: 0.0.40
codegen_flags: <defaults>
</compile_context>

<pallas_src>
import functools

import jax
import jax.numpy as jnp
from jax.experimental import pallas as pl
from jax.experimental.pallas import tpu as pltpu


def two_head_kernel(
    x_ref,          # [TB, H]      bf16  CLS hidden states (batch tile)
    w_mlp_ref,      # [H, 2H]      bf16  [scenario_mlp | action_mlp] fused
    b_mlp_ref,      # [1, 2H]      f32
    w_head_ref,     # [2H, C_pad]  bf16  block-diag [scenario_head | action_head], zero padded
    b_head_ref,     # [1, C_pad]   f32
    labels_ref,     # [TB, 2]      i32   (scenario_label, action_label)
    out_ref,        # [TB, C_pad]  f32   lanes [0,NS+NA) = logits, lane NS+NA = per-row CE
    *,
    n_scenario,
    n_action,
):
    f32 = jnp.float32
    n_classes = n_scenario + n_action

    # Fused MLP: one MXU pass produces [hs | ha] = x @ [Ws_mlp | Wa_mlp] + [bs | ba].
    h = jnp.dot(x_ref[...], w_mlp_ref[...], preferred_element_type=f32) + b_mlp_ref[...]

    # Fused heads: block-diagonal weight -> lane-dense [TB, C_pad] logits slab
    # (cols [0, NS) scenario, [NS, NS+NA) action, rest exact-zero padding).
    logits = (
        jnp.dot(h.astype(jnp.bfloat16), w_head_ref[...], preferred_element_type=f32)
        + b_head_ref[...]
    )

    # Cross entropy (reduction='mean' finished in the wrapper): both heads'
    # softmaxes reduce from the same lane-dense vregs; padded / other-head
    # lanes are masked to a large negative so they never enter the LSE.
    lane = jax.lax.broadcasted_iota(jnp.int32, logits.shape, 1)
    neg = jnp.float32(-1e30)
    s_masked = jnp.where(lane < n_scenario, logits, neg)
    a_masked = jnp.where((lane >= n_scenario) & (lane < n_classes), logits, neg)

    s_max = jnp.max(s_masked, axis=-1, keepdims=True)
    a_max = jnp.max(a_masked, axis=-1, keepdims=True)
    s_lse = s_max + jnp.log(jnp.sum(jnp.exp(s_masked - s_max), axis=-1, keepdims=True))
    a_lse = a_max + jnp.log(jnp.sum(jnp.exp(a_masked - a_max), axis=-1, keepdims=True))

    labels = labels_ref[...]
    s_lab = labels[:, 0:1]                     # scenario class id
    a_lab = labels[:, 1:2] + n_scenario        # action class id shifted into packed lanes
    s_pick = jnp.sum(jnp.where(lane == s_lab, logits, 0.0), axis=-1, keepdims=True)
    a_pick = jnp.sum(jnp.where(lane == a_lab, logits, 0.0), axis=-1, keepdims=True)
    per_row = (s_lse - s_pick) + (a_lse - a_pick)          # [TB, 1]

    # Single unmasked lane-dense store: live logits plus per-row loss in the
    # spare lane (avoids a separate padded / masked scalar output).
    loss_lane = jnp.where(lane == n_classes, per_row, 0.0)
    out_ref[...] = jnp.where(lane < n_classes, logits, loss_lane)


def pack_params(params, n_scenario, n_action):
    """Fuse the two branches at param-init time (done once, outside the kernel)."""
    H = params["ws_mlp"].shape[0]
    n_classes = n_scenario + n_action
    c_pad = ((n_classes + 1 + 127) // 128) * 128   # +1 spare lane for per-row loss

    w_mlp = jnp.concatenate([params["ws_mlp"], params["wa_mlp"]], axis=1).astype(jnp.bfloat16)
    b_mlp = jnp.concatenate([params["bs_mlp"], params["ba_mlp"]], axis=1).astype(jnp.float32)

    w_head = jnp.zeros((2 * H, c_pad), jnp.float32)
    w_head = w_head.at[:H, :n_scenario].set(params["ws_head"])
    w_head = w_head.at[H:, n_scenario:n_classes].set(params["wa_head"])
    w_head = w_head.astype(jnp.bfloat16)

    b_head = jnp.zeros((1, c_pad), jnp.float32)
    b_head = b_head.at[:, :n_scenario].set(params["bs_head"])
    b_head = b_head.at[:, n_scenario:n_classes].set(params["ba_head"])

    return {
        "w_mlp": w_mlp, "b_mlp": b_mlp, "w_head": w_head, "b_head": b_head,
        "n_scenario": n_scenario, "n_action": n_action,
    }


def two_head_net_forward(last_hidden, packed, scenario_label, action_label):
    """Runs the TwoHeadNet heads + CE loss in a single Pallas kernel."""
    B, H = last_hidden.shape
    n_s, n_a = packed["n_scenario"], packed["n_action"]
    n_classes = n_s + n_a
    c_pad = packed["w_head"].shape[1]

    # Batch tile: up to 128 rows, sublane(8)-aligned.  Pad the batch to a
    # multiple of the tile so any batch size works; padded rows are zeros and
    # are simply never read back.
    tb = 128 if B >= 128 else ((B + 7) // 8) * 8
    b_pad = ((B + tb - 1) // tb) * tb
    num_tiles = b_pad // tb

    x = last_hidden.astype(jnp.bfloat16)
    labels = jnp.stack(
        [scenario_label.astype(jnp.int32), action_label.astype(jnp.int32)], axis=1
    )                                               # [B, 2]
    if b_pad != B:
        x = jnp.pad(x, ((0, b_pad - B), (0, 0)))
        labels = jnp.pad(labels, ((0, b_pad - B), (0, 0)))

    kernel = functools.partial(two_head_kernel, n_scenario=n_s, n_action=n_a)

    flops = 2 * b_pad * H * (2 * H) + 2 * b_pad * (2 * H) * c_pad
    bytes_accessed = (
        x.size * 2
        + packed["w_mlp"].size * 2 + packed["w_head"].size * 2
        + packed["b_mlp"].size * 4 + packed["b_head"].size * 4
        + labels.size * 4
        + b_pad * c_pad * 4
    )

    out = pl.pallas_call(
        kernel,
        grid=(num_tiles,),
        in_specs=[
            pl.BlockSpec((tb, H), lambda i: (i, 0)),          # x: tiled over batch
            pl.BlockSpec((H, 2 * H), lambda i: (0, 0)),       # fused MLP weight (VMEM-resident)
            pl.BlockSpec((1, 2 * H), lambda i: (0, 0)),
            pl.BlockSpec((2 * H, c_pad), lambda i: (0, 0)),   # fused head weight (VMEM-resident)
            pl.BlockSpec((1, c_pad), lambda i: (0, 0)),
            pl.BlockSpec((tb, 2), lambda i: (i, 0)),          # packed int labels
        ],
        out_specs=pl.BlockSpec((tb, c_pad), lambda i: (i, 0)),
        out_shape=jax.ShapeDtypeStruct((b_pad, c_pad), jnp.float32),
        compiler_params=pltpu.CompilerParams(
            dimension_semantics=("parallel",),
            vmem_limit_bytes=32 * 1024 * 1024,
        ),
        cost_estimate=pl.CostEstimate(
            flops=flops,
            transcendentals=2 * b_pad * c_pad,
            bytes_accessed=bytes_accessed,
        ),
    )(x, packed["w_mlp"], packed["b_mlp"], packed["w_head"], packed["b_head"], labels)

    slog = out[:B, :n_s]
    alog = out[:B, n_s:n_classes]
    loss = jnp.sum(out[:B, n_classes]) / B          # sum of per-row CE terms / B
    return loss, slog, alog


def init_params(key, hidden, n_scenario, n_action, init_range=0.02):
    ks = jax.random.split(key, 8)
    n = lambda k, shape: (init_range * jax.random.normal(k, shape)).astype(jnp.float32)
    return {
        "ws_mlp": n(ks[0], (hidden, hidden)),
        "bs_mlp": n(ks[1], (1, hidden)),
        "ws_head": n(ks[2], (hidden, n_scenario)),
        "bs_head": n(ks[3], (1, n_scenario)),
        "wa_mlp": n(ks[4], (hidden, hidden)),
        "ba_mlp": n(ks[5], (1, hidden)),
        "wa_head": n(ks[6], (hidden, n_action)),
        "ba_head": n(ks[7], (1, n_action)),
    }


def _reference_forward(last_hidden, params, slab, alab):
    """Pure-JAX reference mirroring the forward (same bf16 matmul / f32 bias+CE policy)."""
    bf16, f32 = jnp.bfloat16, jnp.float32
    x = last_hidden.astype(bf16)
    hs = jnp.dot(x, params["ws_mlp"].astype(bf16), preferred_element_type=f32) + params["bs_mlp"]
    ha = jnp.dot(x, params["wa_mlp"].astype(bf16), preferred_element_type=f32) + params["ba_mlp"]
    slog = jnp.dot(hs.astype(bf16), params["ws_head"].astype(bf16),
                   preferred_element_type=f32) + params["bs_head"]
    alog = jnp.dot(ha.astype(bf16), params["wa_head"].astype(bf16),
                   preferred_element_type=f32) + params["ba_head"]

    def ce(logits, labels):
        lse = jax.scipy.special.logsumexp(logits, axis=-1)
        picked = jnp.take_along_axis(logits, labels[:, None], axis=-1)[:, 0]
        return jnp.mean(lse - picked)

    return ce(slog, slab) + ce(alog, alab), slog, alog


if __name__ == "__main__":
    B, H = 8, 32          # batch, bert hidden size (small synthetic)
    NS, NA = 8, 16        # len(meta['scenario']), len(meta['action'])

    key = jax.random.PRNGKey(0)
    k_x, k_p, k_s, k_a = jax.random.split(key, 4)

    last_hidden = jax.random.normal(k_x, (B, H), dtype=jnp.float32)
    params = init_params(k_p, H, NS, NA)
    packed = pack_params(params, NS, NA)
    scenario_label = jax.random.randint(k_s, (B,), 0, NS, dtype=jnp.int32)
    action_label = jax.random.randint(k_a, (B,), 0, NA, dtype=jnp.int32)

    loss, slog, alog = two_head_net_forward(last_hidden, packed, scenario_label, action_label)
    jax.block_until_ready((loss, slog, alog))

    ref_loss, ref_slog, ref_alog = _reference_forward(
        last_hidden, params, scenario_label, action_label
    )
    assert jnp.allclose(loss, ref_loss, atol=1e-4, rtol=1e-4), (loss, ref_loss)
    assert jnp.allclose(slog, ref_slog, atol=1e-4, rtol=1e-4)
    assert jnp.allclose(alog, ref_alog, atol=1e-4, rtol=1e-4)

    print("KERNEL_OK")
</pallas_src>

<mosaic_0001>
module attributes {stable_mosaic.version = 11 : i64} {
  func.func @two_head_kernel(%arg0: i32, %arg1: memref<8x32xbf16, #tpu.memory_space<vmem>>, %arg2: memref<32x64xbf16, #tpu.memory_space<vmem>>, %arg3: memref<1x64xf32, #tpu.memory_space<vmem>>, %arg4: memref<64x128xbf16, #tpu.memory_space<vmem>>, %arg5: memref<1x128xf32, #tpu.memory_space<vmem>>, %arg6: memref<8x2xi32, #tpu.memory_space<vmem>>, %arg7: memref<8x128xf32, #tpu.memory_space<vmem>>) attributes {dimension_semantics = [#tpu.dimension_semantics<parallel>], iteration_bounds = array<i64: 1>, scalar_prefetch = 0 : i64, scratch_operands = 0 : i64, tpu.core_type = #tpu.core_type<tc>, window_params = [{transform_indices = @transform_0, window_bounds = array<i64: 8, 32>}, {pipeline_mode = #tpu.pipeline_mode<synchronous>, transform_indices = @transform_1, window_bounds = array<i64: 32, 64>}, {pipeline_mode = #tpu.pipeline_mode<synchronous>, transform_indices = @transform_2, window_bounds = array<i64: 1, 64>}, {pipeline_mode = #tpu.pipeline_mode<synchronous>, transform_indices = @transform_3, window_bounds = array<i64: 64, 128>}, {pipeline_mode = #tpu.pipeline_mode<synchronous>, transform_indices = @transform_4, window_bounds = array<i64: 1, 128>}, {transform_indices = @transform_5, window_bounds = array<i64: 8, 2>}, {transform_indices = @transform_6, window_bounds = array<i64: 8, 128>}]} {
    %c0 = arith.constant 0 : index
    %c0_0 = arith.constant 0 : index
    %0 = vector.load %arg1[%c0, %c0_0] : memref<8x32xbf16, #tpu.memory_space<vmem>>, vector<8x32xbf16>
    %c0_1 = arith.constant 0 : index
    %c0_2 = arith.constant 0 : index
    %1 = vector.load %arg2[%c0_1, %c0_2] : memref<32x64xbf16, #tpu.memory_space<vmem>>, vector<32x64xbf16>
    %cst = arith.constant dense<0.000000e+00> : vector<8x64xf32>
    %2 = tpu.matmul %0, %1, %cst {dimension_numbers = #tpu.dot_dimension_numbers<[1], [0], [0], [1], [0, 0, 1, 1], [], []>} : vector<8x32xbf16>, vector<32x64xbf16>, vector<8x64xf32> -> vector<8x64xf32>
    %c0_3 = arith.constant 0 : index
    %c0_4 = arith.constant 0 : index
    %3 = vector.load %arg3[%c0_3, %c0_4] : memref<1x64xf32, #tpu.memory_space<vmem>>, vector<1x64xf32>
    %4 = vector.broadcast %3 : vector<1x64xf32> to vector<8x64xf32>
    %5 = arith.addf %2, %4 : vector<8x64xf32>
    %6 = arith.truncf %5 : vector<8x64xf32> to vector<8x64xbf16>
    %c0_5 = arith.constant 0 : index
    %c0_6 = arith.constant 0 : index
    %7 = vector.load %arg4[%c0_5, %c0_6] : memref<64x128xbf16, #tpu.memory_space<vmem>>, vector<64x128xbf16>
    %cst_7 = arith.constant dense<0.000000e+00> : vector<8x128xf32>
    %8 = tpu.matmul %6, %7, %cst_7 {dimension_numbers = #tpu.dot_dimension_numbers<[1], [0], [0], [1], [0, 0, 1, 1], [], []>} : vector<8x64xbf16>, vector<64x128xbf16>, vector<8x128xf32> -> vector<8x128xf32>
    %c0_8 = arith.constant 0 : index
    %c0_9 = arith.constant 0 : index
    %9 = vector.load %arg5[%c0_8, %c0_9] : memref<1x128xf32, #tpu.memory_space<vmem>>, vector<1x128xf32>
    %10 = vector.broadcast %9 : vector<1x128xf32> to vector<8x128xf32>
    %11 = arith.addf %8, %10 : vector<8x128xf32>
    %12 = tpu.iota {dimensions = array<i32: 1>} : vector<8x128xi32>
    %c8_i32 = arith.constant 8 : i32
    %13 = vector.broadcast %c8_i32 : i32 to vector<8x128xi32>
    %14 = arith.cmpi slt, %12, %13 : vector<8x128xi32>
    %cst_10 = arith.constant -1.000000e+30 : f32
    %15 = vector.broadcast %cst_10 : f32 to vector<8x128xf32>
    %16 = arith.select %14, %11, %15 : vector<8x128xi1>, vector<8x128xf32>
    %c8_i32_11 = arith.constant 8 : i32
    %17 = vector.broadcast %c8_i32_11 : i32 to vector<8x128xi32>
    %18 = arith.cmpi sge, %12, %17 : vector<8x128xi32>
    %c24_i32 = arith.constant 24 : i32
    %19 = vector.broadcast %c24_i32 : i32 to vector<8x128xi32>
    %20 = arith.cmpi slt, %12, %19 : vector<8x128xi32>
    %21 = arith.andi %18, %20 : vector<8x128xi1>
    %cst_12 = arith.constant -1.000000e+30 : f32
    %22 = vector.broadcast %cst_12 : f32 to vector<8x128xf32>
    %23 = arith.select %21, %11, %22 : vector<8x128xi1>, vector<8x128xf32>
    %cst_13 = arith.constant dense<0xFF800000> : vector<8xf32>
    %24 = vector.multi_reduction <maximumf>, %16, %cst_13 [1] : vector<8x128xf32> to vector<8xf32>
    %25 = vector.shape_cast %24 : vector<8xf32> to vector<8x1xf32>
    %cst_14 = arith.constant dense<0xFF800000> : vector<8xf32>
    %26 = vector.multi_reduction <maximumf>, %23, %cst_14 [1] : vector<8x128xf32> to vector<8xf32>
    %27 = vector.shape_cast %26 : vector<8xf32> to vector<8x1xf32>
    %28 = vector.broadcast %25 : vector<8x1xf32> to vector<8x128xf32>
    %29 = arith.subf %16, %28 : vector<8x128xf32>
    %30 = math.exp %29 : vector<8x128xf32>
    %cst_15 = arith.constant dense<0.000000e+00> : vector<8xf32>
    %31 = vector.multi_reduction <add>, %30, %cst_15 [1] : vector<8x128xf32> to vector<8xf32>
    %32 = vector.shape_cast %31 : vector<8xf32> to vector<8x1xf32>
    %33 = math.log %32 : vector<8x1xf32>
    %34 = arith.addf %25, %33 : vector<8x1xf32>
    %35 = vector.broadcast %27 : vector<8x1xf32> to vector<8x128xf32>
    %36 = arith.subf %23, %35 : vector<8x128xf32>
    %37 = math.exp %36 : vector<8x128xf32>
    %cst_16 = arith.constant dense<0.000000e+00> : vector<8xf32>
    %38 = vector.multi_reduction <add>, %37, %cst_16 [1] : vector<8x128xf32> to vector<8xf32>
    %39 = vector.shape_cast %38 : vector<8xf32> to vector<8x1xf32>
    %40 = math.log %39 : vector<8x1xf32>
    %41 = arith.addf %27, %40 : vector<8x1xf32>
    %c0_17 = arith.constant 0 : index
    %c0_18 = arith.constant 0 : index
    %42 = vector.load %arg6[%c0_17, %c0_18] : memref<8x2xi32, #tpu.memory_space<vmem>>, vector<8x2xi32>
    %43 = vector.extract_strided_slice %42 {offsets = [0, 0], sizes = [8, 1], strides = [1, 1]} : vector<8x2xi32> to vector<8x1xi32>
    %44 = vector.extract_strided_slice %42 {offsets = [0, 1], sizes = [8, 1], strides = [1, 1]} : vector<8x2xi32> to vector<8x1xi32>
    %c8_i32_19 = arith.constant 8 : i32
    %45 = vector.broadcast %c8_i32_19 : i32 to vector<8x1xi32>
    %46 = arith.addi %44, %45 : vector<8x1xi32>
    %47 = vector.broadcast %43 : vector<8x1xi32> to vector<8x128xi32>
    %48 = arith.cmpi eq, %12, %47 : vector<8x128xi32>
    %cst_20 = arith.constant 0.000000e+00 : f32
    %49 = vector.broadcast %cst_20 : f32 to vector<8x128xf32>
    %50 = arith.select %48, %11, %49 : vector<8x128xi1>, vector<8x128xf32>
    %cst_21 = arith.constant dense<0.000000e+00> : vector<8xf32>
    %51 = vector.multi_reduction <add>, %50, %cst_21 [1] : vector<8x128xf32> to vector<8xf32>
    %52 = vector.shape_cast %51 : vector<8xf32> to vector<8x1xf32>
    %53 = vector.broadcast %46 : vector<8x1xi32> to vector<8x128xi32>
    %54 = arith.cmpi eq, %12, %53 : vector<8x128xi32>
    %cst_22 = arith.constant 0.000000e+00 : f32
    %55 = vector.broadcast %cst_22 : f32 to vector<8x128xf32>
    %56 = arith.select %54, %11, %55 : vector<8x128xi1>, vector<8x128xf32>
    %cst_23 = arith.constant dense<0.000000e+00> : vector<8xf32>
    %57 = vector.multi_reduction <add>, %56, %cst_23 [1] : vector<8x128xf32> to vector<8xf32>
    %58 = vector.shape_cast %57 : vector<8xf32> to vector<8x1xf32>
    %59 = arith.subf %34, %52 : vector<8x1xf32>
    %60 = arith.subf %41, %58 : vector<8x1xf32>
    %61 = arith.addf %59, %60 : vector<8x1xf32>
    %c24_i32_24 = arith.constant 24 : i32
    %62 = vector.broadcast %c24_i32_24 : i32 to vector<8x128xi32>
    %63 = arith.cmpi eq, %12, %62 : vector<8x128xi32>
    %cst_25 = arith.constant 0.000000e+00 : f32
    %64 = vector.shape_cast %61 : vector<8x1xf32> to vector<8x1xf32>
    %65 = vector.broadcast %64 : vector<8x1xf32> to vector<8x128xf32>
    %66 = vector.broadcast %cst_25 : f32 to vector<8x128xf32>
    %67 = arith.select %63, %65, %66 : vector<8x128xi1>, vector<8x128xf32>
    %c24_i32_26 = arith.constant 24 : i32
    %68 = vector.broadcast %c24_i32_26 : i32 to vector<8x128xi32>
    %69 = arith.cmpi slt, %12, %68 : vector<8x128xi32>
    %70 = arith.select %69, %11, %67 : vector<8x128xi1>, vector<8x128xf32>
    %c0_27 = arith.constant 0 : index
    %c0_28 = arith.constant 0 : index
    %71 = vector.load %arg7[%c0_27, %c0_28] : memref<8x128xf32, #tpu.memory_space<vmem>>, vector<8x128xf32>
    tpu.vector_store %arg7[%c0_27, %c0_28], %70 {strides = array<i32>} : memref<8x128xf32, #tpu.memory_space<vmem>>, vector<8x128xf32>,
    return
  }
  func.func @transform_0(%arg0: i32) -> (i32, i32) {
    %c0_i32 = arith.constant 0 : i32
    %c0_i32_0 = arith.constant 0 : i32
    return %arg0, %c0_i32 : i32, i32
  }
  func.func @transform_1(%arg0: i32) -> (i32, i32) {
    %c0_i32 = arith.constant 0 : i32
    %c0_i32_0 = arith.constant 0 : i32
    %c0_i32_1 = arith.constant 0 : i32
    return %c0_i32, %c0_i32_0 : i32, i32
  }
  func.func @transform_2(%arg0: i32) -> (i32, i32) {
    %c0_i32 = arith.constant 0 : i32
    %c0_i32_0 = arith.constant 0 : i32
    %c0_i32_1 = arith.constant 0 : i32
    return %c0_i32, %c0_i32_0 : i32, i32
  }
  func.func @transform_3(%arg0: i32) -> (i32, i32) {
    %c0_i32 = arith.constant 0 : i32
    %c0_i32_0 = arith.constant 0 : i32
    %c0_i32_1 = arith.constant 0 : i32
    return %c0_i32, %c0_i32_0 : i32, i32
  }
  func.func @transform_4(%arg0: i32) -> (i32, i32) {
    %c0_i32 = arith.constant 0 : i32
    %c0_i32_0 = arith.constant 0 : i32
    %c0_i32_1 = arith.constant 0 : i32
    return %c0_i32, %c0_i32_0 : i32, i32
  }
  func.func @transform_5(%arg0: i32) -> (i32, i32) {
    %c0_i32 = arith.constant 0 : i32
    %c0_i32_0 = arith.constant 0 : i32
    return %arg0, %c0_i32 : i32, i32
  }
  func.func @transform_6(%arg0: i32) -> (i32, i32) {
    %c0_i32 = arith.constant 0 : i32
    %c0_i32_0 = arith.constant 0 : i32
    return %arg0, %c0_i32 : i32, i32
  }
}

</mosaic_0001>

<bundles_post_ra>
// kernel: tpu_custom_call.1
= control target key start
LH: loop header
LB: loop body
LE: loop exit
PB: predicated region body
PF: predicated region fallthrough
CT: control target
= control target key end

     0   :  { %11 = vsyncpa [#allocation3], 0  ;;  %s502_s0 = inlined_call_operand.vmem [shape: bf16[8,32], index: 0, kind: input, shape index: {}]   ;;  %s503_s1 = inlined_call_operand.hbm [shape: bf16[32,64], index: 1, kind: input, shape index: {}]   ;;  %s504_s2 = inlined_call_operand.vmem [shape: f32[1,64], index: 2, kind: input, shape index: {}]   ;;  %s505_s3 = inlined_call_operand.hbm [shape: bf16[64,128], index: 3, kind: input, shape index: {}]   ;;  %s506_s4 = inlined_call_operand.vmem [shape: f32[1,128], index: 4, kind: input, shape index: {}]   ;;  %s507_s5 = inlined_call_operand.vmem [shape: s32[8,2], index: 5, kind: input, shape index: {}]   ;;  %s508_s6 = inlined_call_operand.hbm [shape: f32[8,128], index: 6, kind: output, shape index: {}]  }
   0x1   :  { %12 = vsyncpa [#allocation6], 0 }
   0x2   :  { %13 = vsyncpa [#allocation4], 0  ;;  %s408_s21 = smov [#allocation2]   ;;  %s336_s25 = scalar_lea.hbm %s503_s1, 256 }
   0x3   :  { %s21_s22 = sshll.u32 %s408_s21, 4  ;;  %p337_p0 = scmp.ne.s32.totalorder %s503_s1, %s336_s25  ;;  %s22_s22 = int_to_ptr.vmem [resolvable:$true] %s21_s22 }
   0x4   :  { %p340_p1 = scmp.lt.u32.totalorder %s336_s25, %s503_s1 }
   0x6   :  { %p342_p2 = pnand %p340_p1, %p337_p0 }
   0x8   :  { %345 = shalt.err (!%p342_p2)
}
   0x9   :  { %s346_s30 = scalar_lea.vmem %s22_s22, 256  ;;  %p351_p4 = scmp.lt.s32.totalorder %s22_s22, %s22_s22 }
   0xa   :  { %p347_p3 = scmp.ne.s32.totalorder %s22_s22, %s346_s30  ;;  %p352_p5 = scmp.lt.s32.totalorder %s346_s30, %s346_s30 }
   0xc   :  { %p353_p6 = por %p352_p5, %p351_p4 }
   0xe   :  { %p354_p7 = pnand %p353_p6, %p347_p3 }
  0x10   :  { %357 = shalt.err (!%p354_p7)
}
  0x11   :  { %s409_s7 = smov 64   ;;  %s410_s8 = smov 4  }
  0x12   :  { %27 = dma.hbm_to_vmem [thread:$0]  %s503_s1, 256, %s22_s22, [#allocation3], %s409_s7, %s409_s7, %s410_s8  }
  0x13   :  { %s411_s11 = smov [#allocation5]   ;;  %s358_s15 = scalar_lea.hbm %s505_s3, 512 }
  0x14   :  { %s35_s12 = sshll.u32 %s411_s11, 4  ;;  %p359_p8 = scmp.ne.s32.totalorder %s505_s3, %s358_s15  ;;  %s36_s12 = int_to_ptr.vmem [resolvable:$true] %s35_s12 }
  0x15   :  { %p362_p9 = scmp.lt.u32.totalorder %s358_s15, %s505_s3 }
  0x17   :  { %p364_p10 = pnand %p362_p9, %p359_p8 }
  0x19   :  { %367 = shalt.err (!%p364_p10)
}
  0x1a   :  { %s368_s20 = scalar_lea.vmem %s36_s12, 512  ;;  %p373_p12 = scmp.lt.s32.totalorder %s36_s12, %s36_s12 }
  0x1b   :  { %p369_p11 = scmp.ne.s32.totalorder %s36_s12, %s368_s20  ;;  %p374_p13 = scmp.lt.s32.totalorder %s368_s20, %s368_s20 }
  0x1d   :  { %p375_p0 = por %p374_p13, %p373_p12 }
  0x1f   :  { %p376_p1 = pnand %p375_p0, %p369_p11 }
  0x21   :  { %379 = shalt.err (!%p376_p1)
}
  0x22   :  { %41 = dma.hbm_to_vmem [thread:$0]  %s505_s3, 512, %s36_s12, [#allocation6], %s409_s7, %s409_s7, %s410_s8  }
  0x23   :  { %402 = dma.done.wait [#allocation3], 256  }
  0x24   :  { %403 = vsyncadd [#allocation3], 4294967040 }
  0x25   :  { %404 = dma.done.wait [#allocation6], 512  }
  0x26   :  { %405 = vsyncadd [#allocation6], 4294966784  ;;  %v412_v0 = vmov 0.0   ;;  %vm413_vm0 = vmmov 0   ;;  %v322_v1 = vld [vmem:[#allocation2] sm:$0xff]   ;;  %v323_v2 = vld [vmem:[#allocation2 + $0x8] sm:$0xff]   ;;  %v205_v19 = vlaneseq }
  0x27   :  { %290 = vmatprep.subr.bf16.mxu0 %v412_v0  ;;  %294 = vmatprep.mubr.msk.bf16.mxu0 %vm413_vm0, %v412_v0  ;;  %v324_v3 = vld [vmem:[#allocation5] sm:$0xff]   ;;  %v325_v4 = vld [vmem:[#allocation5 + $0x8] sm:$0xff]   ;;  %v53_v5 = vld [vmem:[%s502_s0] sm:$0xf]  ;;  %vm77_vm1 = vcmask 261120   ;;  %v414_v9 = vmov 0  }
  0x28   :  { %298 = vmatprep.subr.bf16.mxu1 %v412_v0  ;;  %306 = vmatprep.mubr.msk.bf16.mxu1 %vm413_vm0, %v412_v0  ;;  %v326_v6 = vld [vmem:[#allocation5 + $0x10] sm:$0xff]   ;;  %v327_v7 = vld [vmem:[#allocation5 + $0x18] sm:$0xff]   ;;  %v415_v10 = vmov 1   ;;  %vm161_vm2 = vcmask 523264   ;;  %v206_v20 = vand.u32 127, %v205_v19 }
  0x29   :  { %291 = vmatpush3.bf16.msra.mxu0 %v322_v1  ;;  %299 = vmatpush3.bf16.msra.mxu1 %v324_v3  ;;  %v233_v8 = vld [vmem:[%s507_s5] sm:$0xff] }
  0x2a   :  { %292 = vmatprep.subr.bf16.mxu0 %v412_v0  ;;  %300 = vmatprep.subr.bf16.mxu1 %v412_v0  ;;  %v234_v11 = vadd.s32 8, %v233_v8  ;;  %v272_v12 = vld [vmem:[%s504_s2] ss:$0 sm:$0xff]  ;;  %vm207_vm3 = vcmp.lt.s32.totalorder %v206_v20, 8  ;;  %vm209_vm4 = vcmp.ge.s32.totalorder %v206_v20, 8  ;;  %vm210_vm5 = vcmp.lt.s32.totalorder %v206_v20, 24 }
  0x2b   :  { %319 = vset.pattern.permute.xlu1 %v414_v9  ;;  %321 = vset.pattern.permute.xlu0 %v415_v10  ;;  %v276_v21 = vld [vmem:[%s506_s4] ss:$0 sm:$0xff]  ;;  %vm211_vm6 = vmand %vm209_vm4, %vm210_vm5  ;;  %vm252_vm9 = vcmp.eq.s32.totalorder %v206_v20, 24  ;;  %s416_s2 = smov [#allocation7]  }
  0x2c   :  { %236 = vperm.xlu1 %319, %v233_v8   ;;  %s262_s4 = sshll.u32 %s416_s2, 4  ;;  %s263_s4 = int_to_ptr.vmem [resolvable:$true] %s262_s4 }
  0x2d   :  { %293 = vmatpush3.bf16.msra.mxu0 %v323_v2  ;;  %301 = vmatpush3.bf16.msra.mxu1 %v325_v4  ;;  %s380_s27 = scalar_lea.vmem %s263_s4, 128  ;;  %p385_p3 = scmp.lt.s32.totalorder %s263_s4, %s263_s4 }
  0x2e   :  { %302 = vmatprep.subr.bf16.mxu1 %v412_v0  ;;  %p381_p2 = scmp.ne.s32.totalorder %s263_s4, %s380_s27  ;;  %p386_p4 = scmp.lt.s32.totalorder %s380_s27, %s380_s27 }
  0x30   :  { %295 = vmatmul.mubr.msk.bf16.vlgmr.msra.gmra.mrb[0].mxu0 %vm77_vm1, %v53_v5  ;;  %320 = vset.pattern.permute.xlu1 %v415_v10  ;;  %p387_p5 = por %p386_p4, %p385_p3 }
  0x31   :  { %303 = vmatpush3.bf16.msra.mxu1 %v326_v6  ;;  %243 = vperm.xlu1 %320, %v234_v11  }
  0x32   :  { %304 = vmatprep.subr.bf16.mxu1 %v412_v0  ;;  %p388_p6 = pnand %p387_p5, %p381_p2 }
  0x35   :  { %305 = vmatpush3.bf16.msra.mxu1 %v327_v7 }
  0xab   :  { %v237_v35 = vpop.permute.xlu1 %236 }
  0xac   :  { %vm238_vm7 = vcmp.eq.s32.totalorder %v206_v20, %v237_v35 }
  0xb0   :  { %v244_v37 = vpop.permute.xlu1 %243 }
  0xb1   :  { %vm245_vm8 = vcmp.eq.s32.totalorder %v206_v20, %v244_v37 }
 0x103   :  { %v115_v13 = vpop.f32.mrb[0].mxu0 }
 0x104   :  { %v116_v14 = vadd.f32 %v272_v12, %v115_v13  ;;  %v296_v15 = vpop.f32.mrb[1].mxu0 }
 0x105   :  { %v118_v16 = vpop.f32.mrb[2].mxu0 }
 0x106   :  { %v121_v17 = vpack.c.bf16 %v116_v14, %v116_v14  ;;  %v297_v18 = vpop.f32.mrb[3].mxu0 }
 0x108   :  { %307 = vmatmul.mubr.msk.bf16.vlgmr.msra.gmra.mrb[0].mxu1 %vm161_vm2, %v121_v17 }
 0x1db   :  { %v199_v22 = vpop.f32.mrb[0].mxu1 }
 0x1dc   :  { %v200_v23 = vadd.f32 %v276_v21, %v199_v22  ;;  %v308_v24 = vpop.f32.mrb[1].mxu1 }
 0x1dd   :  { %v202_v25 = vpop.f32.mrb[2].mxu1 }
 0x1de   :  { %v309_v26 = vpop.f32.mrb[3].mxu1  ;;  %v208_v27 = vsel %vm207_vm3, %v200_v23, -1e+30  ;;  %v212_v28 = vsel %vm211_vm6, %v200_v23, -1e+30  ;;  %v239_v39 = vsel %vm238_vm7, %v200_v23, 0.0 }
 0x1df   :  { %213 = vmax.xlane.f32.xlu0 %v208_v27  ;;  %v246_v40 = vsel %vm245_vm8, %v200_v23, 0.0 }
 0x1e3   :  { %215 = vmax.xlane.f32.xlu0 %v212_v28 }
 0x26c   :  { %v214_v29 = vpop.xlane.xlu0 %213 }
 0x26d   :  { %v217_v30 = vsub.f32 %v208_v27, %v214_v29 }
 0x26f   :  { %v218_v31 = vmul.f32 1.442695, %v217_v30 }
 0x270   :  { %v216_v32 = vpop.xlane.xlu0 %215 }
 0x271   :  { %328 = vpow2.f32 %v218_v31  ;;  %v225_v33 = vsub.f32 %v212_v28, %v216_v32 }
 0x273   :  { %v226_v34 = vmul.f32 1.442695, %v225_v33 }
 0x275   :  { %330 = vpow2.f32 %v226_v34 }
 0x27b   :  { %v329_v36 = vpop.eup %328 }
 0x27c   :  { %220 = vadd.xlane.f32.xlu0 %v329_v36 }
 0x27f   :  { %v331_v38 = vpop.eup %330 }
 0x280   :  { %240 = vadd.xlane.f32.xlu0 %v239_v39  ;;  %228 = vadd.xlane.f32.xlu1 %v331_v38 }
 0x284   :  { %247 = vadd.xlane.f32.xlu0 %v246_v40 }
 0x309   :  { %v221_v41 = vpop.xlane.xlu0 %220 }
 0x30a   :  { %332 = vlog2.f32 %v221_v41 }
 0x30d   :  { %v229_v42 = vpop.xlane.xlu1 %228  ;;  %v241_v45 = vpop.xlane.xlu0 %240 }
 0x30e   :  { %334 = vlog2.f32 %v229_v42 }
 0x311   :  { %v248_v50 = vpop.xlane.xlu0 %247 }
 0x314   :  { %v333_v43 = vpop.eup %332 }
 0x315   :  { %v223_v44 = vmul.f32 0.6931472, %v333_v43 }
 0x317   :  { %v224_v48 = vadd.f32 %v223_v44, %v214_v29 }
 0x318   :  { %v335_v46 = vpop.eup %334 }
 0x319   :  { %v231_v47 = vmul.f32 0.6931472, %v335_v46  ;;  %v249_v51 = vsub.f32 %v224_v48, %v241_v45 }
 0x31b   :  { %v232_v49 = vadd.f32 %v231_v47, %v216_v32 }
 0x31d   :  { %v250_v52 = vsub.f32 %v232_v49, %v248_v50 }
 0x31f   :  { %v251_v53 = vadd.f32 %v250_v52, %v249_v51 }
 0x321   :  { %v253_v54 = vsel %vm252_vm9, %v251_v53, 0.0 }
 0x322   :  { %v254_v55 = vsel %vm210_vm5, %v200_v23, %v253_v54 }
 0x323   :  { %255 = vst [vmem:[#allocation7] sm:$0xff] %v254_v55 }
 0x324   :  { %391 = shalt.err (!%p388_p6)
}
 0x325   :  { %s392_s30 = scalar_lea.hbm %s508_s6, 128 }
 0x326   :  { %p393_p7 = scmp.ne.s32.totalorder %s508_s6, %s392_s30  ;;  %p396_p8 = scmp.lt.u32.totalorder %s392_s30, %s508_s6 }
 0x328   :  { %p398_p9 = pnand %p396_p8, %p393_p7 }
 0x32a   :  { %401 = shalt.err (!%p398_p9)
}
 0x32b   :  { %265 = dma.vmem_to_hbm [thread:$0]  %s263_s4, 128, %s508_s6, [#allocation4]  }
 0x32c   :  { %406 = dma.done.wait [#allocation4], 128  }
 0x32d   :  { %407 = vsyncadd [#allocation4], 4294967168 }
 0x32e   :  { %269 = vsyncpa [#allocation3], 1 }
 0x32f   :  { %270 = vsyncpa [#allocation6], 1 }
 0x330   :  { %271 = vsyncpa [#allocation4], 1 }

</bundles_post_ra>
